<compile_context>
chip_gen: v7x
topology: tpu7x:2x2x1
jax: 0.10.0
libtpu: 0.0.40
codegen_flags: <defaults>
</compile_context>

<pallas_src>
import functools
import math

import jax
import jax.numpy as jnp
from jax.experimental import pallas as pl
from jax.experimental.pallas import tpu as pltpu


# ------------------------------- small helpers ---------------------------------

def _round_up(x, m):
    return -(-x // m) * m


def _divisor_tile(n, pref, step):
    """Largest multiple of `step` <= pref that divides n, else n (full extent)."""
    if n <= pref:
        return n
    t = (pref // step) * step
    while t >= step:
        if n % t == 0:
            return t
        t -= step
    return n


def _pick_row_tiling(rows, pref):
    """Row (M) tile + padded row count; avoid padding beyond a multiple of 8
    except as a fallback for large, awkward row counts."""
    rows8 = _round_up(rows, 8)
    if rows8 <= pref:
        return rows8, rows8
    t = _divisor_tile(rows8, pref, 8)
    if 128 <= t <= pref:
        return t, rows8
    rows_p = _round_up(rows, 256)
    return 256, rows_p


def _mosaic_params(dims, vmem_need_bytes):
    limit = int(min(128 * 1024 * 1024, max(2 * vmem_need_bytes, 32 * 1024 * 1024)))
    return pltpu.CompilerParams(dimension_semantics=dims, vmem_limit_bytes=limit)


# --------------------------- Linear: y = x @ W^T + b ---------------------------

def _linear_kernel_noacc(x_ref, wt_ref, b_ref, o_ref):
    # Single K step: no accumulator round trip needed.
    acc = jnp.dot(x_ref[...], wt_ref[...], preferred_element_type=jnp.float32)
    o_ref[...] = (acc + b_ref[...].astype(jnp.float32)).astype(o_ref.dtype)


def _linear_kernel(x_ref, wt_ref, b_ref, o_ref, acc_ref):
    kk = pl.program_id(2)

    @pl.when(kk == 0)
    def _():
        acc_ref[...] = jnp.zeros_like(acc_ref)

    acc_ref[...] += jnp.dot(x_ref[...], wt_ref[...],
                            preferred_element_type=jnp.float32)

    @pl.when(kk == pl.num_programs(2) - 1)
    def _():
        o_ref[...] = (acc_ref[...] + b_ref[...].astype(jnp.float32)).astype(o_ref.dtype)


def _linear(x2d, w, b, *, tm_pref=512, tn_pref=512, tk_pref=1024):
    """x2d: (rows, K); w: (N, K) in PyTorch nn.Linear layout; b: (N,). -> (rows, N)."""
    rows, K = x2d.shape
    N = w.shape[0]
    out_dtype = x2d.dtype

    wt = jnp.transpose(w)                       # (K, N) — layout plumbing in wrapper
    b2d = b.reshape(1, N)

    # Tiles: N/K tiles are multiples of 128 (or full extent) so blocks stay lane-legal.
    tn = _divisor_tile(N, tn_pref, 128)
    tk = _divisor_tile(K, tk_pref, 128)
    tm, rows_p = _pick_row_tiling(rows, tm_pref)

    grid_n = N // tn
    grid_k = K // tk
    grid_m = rows_p // tm
    # v7x megacore: keep >=2 steps on the parallel axes when we can.
    if grid_m * grid_n == 1 and tm % 16 == 0:
        tm //= 2
        grid_m = rows_p // tm

    xp = x2d if rows_p == rows else jnp.pad(x2d, ((0, rows_p - rows), (0, 0)))

    x_spec = pl.BlockSpec((tm, tk), lambda i, j, k: (i, k))
    w_bytes = K * N * wt.dtype.itemsize
    if grid_n == 1 and grid_k == 1 and w_bytes >= (4 << 20):
        # Grid-invariant weight: single-buffer it (halves resident weight VMEM).
        w_spec = pl.BlockSpec((tk, tn), lambda i, j, k: (0, 0),
                              pipeline_mode=pl.Buffered(1))
    else:
        w_spec = pl.BlockSpec((tk, tn), lambda i, j, k: (k, j))
    b_spec = pl.BlockSpec((1, tn), lambda i, j, k: (0, j))
    o_spec = pl.BlockSpec((tm, tn), lambda i, j, k: (i, j))

    itm = jnp.dtype(out_dtype).itemsize
    vmem_need = (2 * tm * tk * itm                      # activation tile (double buf)
                 + 2 * tk * tn * wt.dtype.itemsize      # weight tile
                 + 2 * tn * b2d.dtype.itemsize          # bias tile
                 + 2 * tm * tn * itm                    # output tile
                 + tm * tn * 4)                         # f32 accumulator

    if grid_k == 1:
        kernel = _linear_kernel_noacc
        scratch = []
    else:
        kernel = _linear_kernel
        scratch = [pltpu.VMEM((tm, tn), jnp.float32)]

    out = pl.pallas_call(
        kernel,
        out_shape=jax.ShapeDtypeStruct((rows_p, N), out_dtype),
        grid_spec=pltpu.PrefetchScalarGridSpec(
            num_scalar_prefetch=0,
            grid=(grid_m, grid_n, grid_k),
            in_specs=[x_spec, w_spec, b_spec],
            out_specs=o_spec,
            scratch_shapes=scratch,
        ),
        compiler_params=_mosaic_params(("parallel", "parallel", "arbitrary"),
                                       vmem_need),
    )(xp, wt, b2d)
    return out if rows_p == rows else out[:rows]


# ------------------- Scaled-dot-product attention (flash style) ----------------

def _mha_kernel(q_ref, k_ref, v_ref, o_ref, m_sc, l_sc, acc_sc, *,
                sm_scale, kv_len, block_k, need_mask):
    # q_ref/o_ref: (G, tq, d); k_ref/v_ref: (G, tk, d). G heads batched per step.
    kv = pl.program_id(2)

    @pl.when(kv == 0)
    def _():
        m_sc[...] = jnp.full_like(m_sc, -jnp.inf)
        l_sc[...] = jnp.zeros_like(l_sc)
        acc_sc[...] = jnp.zeros_like(acc_sc)

    # Native-dtype operands into the MXU; accumulate in f32.
    s = jnp.einsum('gqd,gkd->gqk', q_ref[...], k_ref[...],
                   preferred_element_type=jnp.float32) * jnp.float32(sm_scale)

    if need_mask:  # static flag: only emitted when the kv axis was padded
        col = jax.lax.broadcasted_iota(jnp.int32, s.shape, 2)
        s = jnp.where(col + kv * block_k < kv_len, s, jnp.float32(-1e30))

    # TODO(synk): optional attention `mask` (masked_fill) not implemented.
    m_prev = m_sc[...]
    m_new = jnp.maximum(m_prev, s.max(axis=-1, keepdims=True))
    alpha = jnp.exp(m_prev - m_new)
    p = jnp.exp(s - m_new)
    l_sc[...] = alpha * l_sc[...] + p.sum(axis=-1, keepdims=True)
    # TODO(synk): training-mode dropout on `p` not implemented (eval-mode identity).
    acc_sc[...] = alpha * acc_sc[...] + jnp.einsum(
        'gqk,gkd->gqd', p.astype(v_ref.dtype), v_ref[...],
        preferred_element_type=jnp.float32)
    m_sc[...] = m_new

    @pl.when(kv == pl.num_programs(2) - 1)
    def _():
        # Exact reciprocal for f32 outputs; approx (EUP) for lower-precision outputs.
        approx = jnp.dtype(o_ref.dtype) != jnp.dtype(jnp.float32)
        inv_l = pl.reciprocal(l_sc[...], approx=approx)
        o_ref[...] = (acc_sc[...] * inv_l).astype(o_ref.dtype)


def _seq_tiling(s, pref=256):
    """Return (tile, padded_len). Multiples of 128 stream with fixed tiles; small
    sequences use one full-extent tile padded to a multiple of 8; otherwise pad to
    a multiple of 128 and stream 128-wide tiles (padded kv columns are masked)."""
    if s % 128 == 0:
        for t in (pref, 128):
            if s % t == 0:
                return t, s
        return 128, s
    if s <= 256:
        sp = _round_up(s, 8)
        return sp, sp
    sp = _round_up(s, 128)
    return 128, sp


def _pick_head_group(bh, tq, tk, d, itemsize):
    """Largest divisor G of B*H whose per-step footprint stays modest, while keeping
    >=2 steps on the leading (parallel) grid axis when possible."""
    budget = 6 * 1024 * 1024
    best = 1
    for g in range(1, bh + 1):
        if bh % g:
            continue
        per_step = (2 * g * (2 * tq + 2 * tk) * d * itemsize   # q,k,v,o double-buffered
                    + g * (tq * d + 2 * tq) * 4                # f32 scratch
                    + 2 * g * tq * tk * 4)                     # score / p temporaries
        if per_step <= budget:
            best = g
    while best > 1 and bh // best < 2:
        g = best - 1
        while g > 1 and bh % g:
            g -= 1
        best = g
    return best


def _attention(qh, kh, vh, *, sm_scale):
    """qh: (B*H, Sq, d); kh, vh: (B*H, Sk, d). Returns (B*H, Sq, d)."""
    bh, sq, d = qh.shape
    _, sk, _ = kh.shape
    itemsize = jnp.dtype(qh.dtype).itemsize

    tq, sq_p = _seq_tiling(sq)
    tk, sk_p = _seq_tiling(sk)
    need_mask = sk_p != sk

    if sq_p != sq:
        qh = jnp.pad(qh, ((0, 0), (0, sq_p - sq), (0, 0)))
    if sk_p != sk:
        kh = jnp.pad(kh, ((0, 0), (0, sk_p - sk), (0, 0)))
        vh = jnp.pad(vh, ((0, 0), (0, sk_p - sk), (0, 0)))

    g = _pick_head_group(bh, tq, tk, d, itemsize)

    kern = functools.partial(_mha_kernel, sm_scale=sm_scale, kv_len=sk,
                             block_k=tk, need_mask=need_mask)

    vmem_need = (2 * g * (2 * tq + 2 * tk) * d * itemsize
                 + g * (tq * d + 2 * tq) * 4
                 + 2 * g * tq * tk * 4)

    out = pl.pallas_call(
        kern,
        out_shape=jax.ShapeDtypeStruct((bh, sq_p, d), qh.dtype),
        grid_spec=pltpu.PrefetchScalarGridSpec(
            num_scalar_prefetch=0,
            grid=(bh // g, sq_p // tq, sk_p // tk),
            in_specs=[
                pl.BlockSpec((g, tq, d), lambda b, qi, ki: (b, qi, 0)),
                pl.BlockSpec((g, tk, d), lambda b, qi, ki: (b, ki, 0)),
                pl.BlockSpec((g, tk, d), lambda b, qi, ki: (b, ki, 0)),
            ],
            out_specs=pl.BlockSpec((g, tq, d), lambda b, qi, ki: (b, qi, 0)),
            scratch_shapes=[
                pltpu.VMEM((g, tq, 1), jnp.float32),   # running max m
                pltpu.VMEM((g, tq, 1), jnp.float32),   # running denom l
                pltpu.VMEM((g, tq, d), jnp.float32),   # output accumulator
            ],
        ),
        compiler_params=_mosaic_params(("parallel", "parallel", "arbitrary"),
                                       vmem_need),
    )(qh, kh, vh)
    return out if sq_p == sq else out[:, :sq]


# ----------------------------- Full module forward ------------------------------

@functools.partial(jax.jit, static_argnames=("n_heads",))
def _forward_self(x, params, *, n_heads):
    """True self-attention path (query is key is value): fused QKV projection."""
    B, S, hidden = x.shape
    assert hidden % n_heads == 0
    d = hidden // n_heads
    sm_scale = 1.0 / math.sqrt(d)

    # Fused QKV: one pass over the activation, lane-dense (rows, 3H) output slab.
    w_qkv = jnp.concatenate([params["w_q"], params["w_k"], params["w_v"]], axis=0)
    b_qkv = jnp.concatenate([params["b_q"], params["b_k"], params["b_v"]], axis=0)
    qkv = _linear(x.reshape(B * S, hidden), w_qkv, b_qkv)           # (B*S, 3H)

    def to_heads(t2d):
        return (t2d.reshape(B, S, n_heads, d)
                   .transpose(0, 2, 1, 3)
                   .reshape(B * n_heads, S, d))

    q = to_heads(qkv[:, :hidden])
    k = to_heads(qkv[:, hidden:2 * hidden])
    v = to_heads(qkv[:, 2 * hidden:])

    oh = _attention(q, k, v, sm_scale=sm_scale)
    o = (oh.reshape(B, n_heads, S, d)
           .transpose(0, 2, 1, 3)
           .reshape(B * S, hidden))
    out = _linear(o, params["fc_w"], params["fc_b"])
    return out.reshape(B, S, hidden)


@functools.partial(jax.jit, static_argnames=("n_heads",))
def _forward_general(query, key, value, params, *, n_heads):
    """Generic path: distinct query/key/value tensors (separate projections)."""
    B, Sq, hidden = query.shape
    _, Sk, _ = key.shape
    d = hidden // n_heads
    sm_scale = 1.0 / math.sqrt(d)

    q2 = _linear(query.reshape(B * Sq, hidden), params["w_q"], params["b_q"])
    k2 = _linear(key.reshape(B * Sk, hidden), params["w_k"], params["b_k"])
    v2 = _linear(value.reshape(B * Sk, hidden), params["w_v"], params["b_v"])

    def to_heads(t2d, s):
        return (t2d.reshape(B, s, n_heads, d)
                   .transpose(0, 2, 1, 3)
                   .reshape(B * n_heads, s, d))

    oh = _attention(to_heads(q2, Sq), to_heads(k2, Sk), to_heads(v2, Sk),
                    sm_scale=sm_scale)
    o = (oh.reshape(B, n_heads, Sq, d)
           .transpose(0, 2, 1, 3)
           .reshape(B * Sq, hidden))
    out = _linear(o, params["fc_w"], params["fc_b"])
    return out.reshape(B, Sq, hidden)


def multi_head_self_attention(query, key, value, params, *, n_heads):
    """Eval-mode forward of the PyTorch MultiHeadSelfAttention (mask=None)."""
    if query is key and key is value:
        return _forward_self(query, params, n_heads=n_heads)
    return _forward_general(query, key, value, params, n_heads=n_heads)


# ------------------------------- Pure-JAX reference -----------------------------

def _reference(query, key, value, params, n_heads):
    B, Sq, hidden = query.shape
    d = hidden // n_heads

    def lin(x, w, b):
        return x @ w.T + b

    Q = lin(query, params["w_q"], params["b_q"])
    K = lin(key, params["w_k"], params["b_k"])
    V = lin(value, params["w_v"], params["b_v"])

    def heads(t):
        s = t.shape[1]
        return t.reshape(B, s, n_heads, d).transpose(0, 2, 1, 3)

    Qh, Kh, Vh = heads(Q), heads(K), heads(V)
    energy = jnp.einsum("bhqd,bhkd->bhqk", Qh, Kh) / jnp.sqrt(jnp.float32(d))
    attn = jax.nn.softmax(energy, axis=-1)
    seq = jnp.einsum("bhqk,bhkd->bhqd", attn, Vh)
    seq = seq.transpose(0, 2, 1, 3).reshape(B, Sq, hidden)
    return lin(seq, params["fc_w"], params["fc_b"])


if __name__ == "__main__":
    # Small shapes implied by the module: batch=2, seq=8, hidden=32, n_heads=4.
    B, S, hidden, n_heads = 2, 8, 32, 4

    key = jax.random.PRNGKey(0)
    ks = jax.random.split(key, 10)
    x = jax.random.normal(ks[0], (B, S, hidden), dtype=jnp.float32)

    # nn.Linear-style init: uniform(-1/sqrt(in), 1/sqrt(in)), W is (out, in).
    lim = 1.0 / math.sqrt(hidden)

    def u(k, shape):
        return jax.random.uniform(k, shape, jnp.float32, -lim, lim)

    params = {
        "w_q": u(ks[1], (hidden, hidden)), "b_q": u(ks[2], (hidden,)),
        "w_k": u(ks[3], (hidden, hidden)), "b_k": u(ks[4], (hidden,)),
        "w_v": u(ks[5], (hidden, hidden)), "b_v": u(ks[6], (hidden,)),
        "fc_w": u(ks[7], (hidden, hidden)), "fc_b": u(ks[8], (hidden,)),
    }

    out = multi_head_self_attention(x, x, x, params, n_heads=n_heads)
    jax.block_until_ready(out)
    ref = _reference(x, x, x, params, n_heads)
    assert out.shape == ref.shape, "shape mismatch vs reference"
    assert jnp.allclose(out, ref, atol=2e-3, rtol=2e-3), "mismatch vs reference"

    # Second config: sequence length not a multiple of 8 exercises the padded +
    # masked kv-tile path.
    S2 = 12
    x2 = jax.random.normal(ks[9], (B, S2, hidden), dtype=jnp.float32)
    out2 = multi_head_self_attention(x2, x2, x2, params, n_heads=n_heads)
    jax.block_until_ready(out2)
    ref2 = _reference(x2, x2, x2, params, n_heads)
    assert out2.shape == ref2.shape, "shape mismatch vs reference (padded case)"
    assert jnp.allclose(out2, ref2, atol=2e-3, rtol=2e-3), "mismatch vs reference (padded case)"

    print("KERNEL_OK")
</pallas_src>

<mosaic_0001>
module attributes {stable_mosaic.version = 11 : i64} {
  func.func @_linear_kernel_noacc(%arg0: i32, %arg1: i32, %arg2: i32, %arg3: memref<8x32xf32, #tpu.memory_space<vmem>>, %arg4: memref<32x96xf32, #tpu.memory_space<vmem>>, %arg5: memref<1x96xf32, #tpu.memory_space<vmem>>, %arg6: memref<8x96xf32, #tpu.memory_space<vmem>>) attributes {dimension_semantics = [#tpu.dimension_semantics<parallel>, #tpu.dimension_semantics<parallel>, #tpu.dimension_semantics<arbitrary>], iteration_bounds = array<i64: 2, 1, 1>, scalar_prefetch = 0 : i64, scratch_operands = 0 : i64, tpu.core_type = #tpu.core_type<tc>, window_params = [{transform_indices = @transform_0, window_bounds = array<i64: 8, 32>}, {transform_indices = @transform_1, window_bounds = array<i64: 32, 96>}, {transform_indices = @transform_2, window_bounds = array<i64: 1, 96>}, {transform_indices = @transform_3, window_bounds = array<i64: 8, 96>}]} {
    %c0 = arith.constant 0 : index
    %c0_0 = arith.constant 0 : index
    %0 = vector.load %arg3[%c0, %c0_0] : memref<8x32xf32, #tpu.memory_space<vmem>>, vector<8x32xf32>
    %c0_1 = arith.constant 0 : index
    %c0_2 = arith.constant 0 : index
    %1 = vector.load %arg4[%c0_1, %c0_2] : memref<32x96xf32, #tpu.memory_space<vmem>>, vector<32x96xf32>
    %cst = arith.constant dense<0.000000e+00> : vector<8x96xf32>
    %2 = tpu.matmul %0, %1, %cst {dimension_numbers = #tpu.dot_dimension_numbers<[1], [0], [0], [1], [0, 0, 1, 1], [], []>} : vector<8x32xf32>, vector<32x96xf32>, vector<8x96xf32> -> vector<8x96xf32>
    %c0_3 = arith.constant 0 : index
    %c0_4 = arith.constant 0 : index
    %3 = vector.load %arg5[%c0_3, %c0_4] : memref<1x96xf32, #tpu.memory_space<vmem>>, vector<1x96xf32>
    %4 = vector.broadcast %3 : vector<1x96xf32> to vector<8x96xf32>
    %5 = arith.addf %2, %4 : vector<8x96xf32>
    %c0_5 = arith.constant 0 : index
    %c0_6 = arith.constant 0 : index
    %6 = vector.load %arg6[%c0_5, %c0_6] : memref<8x96xf32, #tpu.memory_space<vmem>>, vector<8x96xf32>
    tpu.vector_store %arg6[%c0_5, %c0_6], %5 {strides = array<i32>} : memref<8x96xf32, #tpu.memory_space<vmem>>, vector<8x96xf32>,
    return
  }
  func.func @transform_0(%arg0: i32, %arg1: i32, %arg2: i32) -> (i32, i32) {
    %c0_i32 = arith.constant 0 : i32
    return %arg0, %arg2 : i32, i32
  }
  func.func @transform_1(%arg0: i32, %arg1: i32, %arg2: i32) -> (i32, i32) {
    %c0_i32 = arith.constant 0 : i32
    return %arg2, %arg1 : i32, i32
  }
  func.func @transform_2(%arg0: i32, %arg1: i32, %arg2: i32) -> (i32, i32) {
    %c0_i32 = arith.constant 0 : i32
    %c0_i32_0 = arith.constant 0 : i32
    return %c0_i32, %arg1 : i32, i32
  }
  func.func @transform_3(%arg0: i32, %arg1: i32, %arg2: i32) -> (i32, i32) {
    %c0_i32 = arith.constant 0 : i32
    return %arg0, %arg1 : i32, i32
  }
}

module attributes {stable_mosaic.version = 11 : i64} {
  func.func @_mha_kernel(%arg0: i32, %arg1: i32, %arg2: i32, %arg3: memref<4x8x8xf32, #tpu.memory_space<vmem>>, %arg4: memref<4x8x8xf32, #tpu.memory_space<vmem>>, %arg5: memref<4x8x8xf32, #tpu.memory_space<vmem>>, %arg6: memref<4x8x8xf32, #tpu.memory_space<vmem>>, %arg7: memref<4x8x1xf32, #tpu.memory_space<vmem>>, %arg8: memref<4x8x1xf32, #tpu.memory_space<vmem>>, %arg9: memref<4x8x8xf32, #tpu.memory_space<vmem>>) attributes {dimension_semantics = [#tpu.dimension_semantics<parallel>, #tpu.dimension_semantics<parallel>, #tpu.dimension_semantics<arbitrary>], iteration_bounds = array<i64: 2, 1, 1>, scalar_prefetch = 0 : i64, scratch_operands = 3 : i64, tpu.core_type = #tpu.core_type<tc>, window_params = [{transform_indices = @transform_0, window_bounds = array<i64: 4, 8, 8>}, {transform_indices = @transform_1, window_bounds = array<i64: 4, 8, 8>}, {transform_indices = @transform_2, window_bounds = array<i64: 4, 8, 8>}, {transform_indices = @transform_3, window_bounds = array<i64: 4, 8, 8>}]} {
    %c0_i32 = arith.constant 0 : i32
    %0 = arith.cmpi eq, %arg2, %c0_i32 : i32
    %1 = arith.extui %0 : i1 to i32
    %c0_i32_0 = arith.constant 0 : i32
    %2 = arith.cmpi ne, %1, %c0_i32_0 : i32
    scf.if %2 {
      %cst_33 = arith.constant 0xFF800000 : f32
      %34 = vector.broadcast %cst_33 : f32 to vector<4x8x1xf32>
      %c0_34 = arith.constant 0 : index
      %c0_35 = arith.constant 0 : index
      %c0_36 = arith.constant 0 : index
      %35 = vector.load %arg7[%c0_34, %c0_35, %c0_36] : memref<4x8x1xf32, #tpu.memory_space<vmem>>, vector<4x8x1xf32>
      tpu.vector_store %arg7[%c0_34, %c0_35, %c0_36], %34 {strides = array<i32>} : memref<4x8x1xf32, #tpu.memory_space<vmem>>, vector<4x8x1xf32>,
      %cst_37 = arith.constant 0.000000e+00 : f32
      %36 = vector.broadcast %cst_37 : f32 to vector<4x8x1xf32>
      %c0_38 = arith.constant 0 : index
      %c0_39 = arith.constant 0 : index
      %c0_40 = arith.constant 0 : index
      %37 = vector.load %arg8[%c0_38, %c0_39, %c0_40] : memref<4x8x1xf32, #tpu.memory_space<vmem>>, vector<4x8x1xf32>
      tpu.vector_store %arg8[%c0_38, %c0_39, %c0_40], %36 {strides = array<i32>} : memref<4x8x1xf32, #tpu.memory_space<vmem>>, vector<4x8x1xf32>,
      %cst_41 = arith.constant 0.000000e+00 : f32
      %38 = vector.broadcast %cst_41 : f32 to vector<4x8x8xf32>
      %c0_42 = arith.constant 0 : index
      %c0_43 = arith.constant 0 : index
      %c0_44 = arith.constant 0 : index
      %39 = vector.load %arg9[%c0_42, %c0_43, %c0_44] : memref<4x8x8xf32, #tpu.memory_space<vmem>>, vector<4x8x8xf32>
      tpu.vector_store %arg9[%c0_42, %c0_43, %c0_44], %38 {strides = array<i32>} : memref<4x8x8xf32, #tpu.memory_space<vmem>>, vector<4x8x8xf32>,
    } else {
    }
    %c0 = arith.constant 0 : index
    %c0_1 = arith.constant 0 : index
    %c0_2 = arith.constant 0 : index
    %3 = vector.load %arg3[%c0, %c0_1, %c0_2] : memref<4x8x8xf32, #tpu.memory_space<vmem>>, vector<4x8x8xf32>
    %c0_3 = arith.constant 0 : index
    %c0_4 = arith.constant 0 : index
    %c0_5 = arith.constant 0 : index
    %4 = vector.load %arg4[%c0_3, %c0_4, %c0_5] : memref<4x8x8xf32, #tpu.memory_space<vmem>>, vector<4x8x8xf32>
    "tpu.trace_start"() <{level = 10 : i32, message = "gqd,gkd->gqk"}> : () -> ()
    %cst = arith.constant dense<0.000000e+00> : vector<4x8x8xf32>
    %5 = tpu.matmul %3, %4, %cst {dimension_numbers = #tpu.dot_dimension_numbers<[2], [2], [1], [1], [0, 0, 0, 1, 1, 1], [0], [0]>} : vector<4x8x8xf32>, vector<4x8x8xf32>, vector<4x8x8xf32> -> vector<4x8x8xf32>
    "tpu.trace_stop"() : () -> ()
    %cst_6 = arith.constant 0.353553385 : f32
    %6 = vector.broadcast %cst_6 : f32 to vector<4x8x8xf32>
    %7 = arith.mulf %5, %6 : vector<4x8x8xf32>
    %c0_7 = arith.constant 0 : index
    %c0_8 = arith.constant 0 : index
    %c0_9 = arith.constant 0 : index
    %8 = vector.load %arg7[%c0_7, %c0_8, %c0_9] : memref<4x8x1xf32, #tpu.memory_space<vmem>>, vector<4x8x1xf32>
    %cst_10 = arith.constant dense<0xFF800000> : vector<4x8xf32>
    %9 = vector.multi_reduction <maximumf>, %7, %cst_10 [2] : vector<4x8x8xf32> to vector<4x8xf32>
    %10 = vector.shape_cast %9 : vector<4x8xf32> to vector<4x8x1xf32>
    %11 = arith.maximumf %8, %10 : vector<4x8x1xf32>
    %12 = arith.subf %8, %11 : vector<4x8x1xf32>
    %13 = math.exp %12 : vector<4x8x1xf32>
    %14 = vector.broadcast %11 : vector<4x8x1xf32> to vector<4x8x8xf32>
    %15 = arith.subf %7, %14 : vector<4x8x8xf32>
    %16 = math.exp %15 : vector<4x8x8xf32>
    %c0_11 = arith.constant 0 : index
    %c0_12 = arith.constant 0 : index
    %c0_13 = arith.constant 0 : index
    %17 = vector.load %arg8[%c0_11, %c0_12, %c0_13] : memref<4x8x1xf32, #tpu.memory_space<vmem>>, vector<4x8x1xf32>
    %18 = arith.mulf %13, %17 : vector<4x8x1xf32>
    %cst_14 = arith.constant dense<0.000000e+00> : vector<4x8xf32>
    %19 = vector.multi_reduction <add>, %16, %cst_14 [2] : vector<4x8x8xf32> to vector<4x8xf32>
    %20 = vector.shape_cast %19 : vector<4x8xf32> to vector<4x8x1xf32>
    %21 = arith.addf %18, %20 : vector<4x8x1xf32>
    %c0_15 = arith.constant 0 : index
    %c0_16 = arith.constant 0 : index
    %c0_17 = arith.constant 0 : index
    %22 = vector.load %arg8[%c0_15, %c0_16, %c0_17] : memref<4x8x1xf32, #tpu.memory_space<vmem>>, vector<4x8x1xf32>
    tpu.vector_store %arg8[%c0_15, %c0_16, %c0_17], %21 {strides = array<i32>} : memref<4x8x1xf32, #tpu.memory_space<vmem>>, vector<4x8x1xf32>,
    %c0_18 = arith.constant 0 : index
    %c0_19 = arith.constant 0 : index
    %c0_20 = arith.constant 0 : index
    %23 = vector.load %arg9[%c0_18, %c0_19, %c0_20] : memref<4x8x8xf32, #tpu.memory_space<vmem>>, vector<4x8x8xf32>
    %24 = vector.broadcast %13 : vector<4x8x1xf32> to vector<4x8x8xf32>
    %25 = arith.mulf %24, %23 : vector<4x8x8xf32>
    %c0_21 = arith.constant 0 : index
    %c0_22 = arith.constant 0 : index
    %c0_23 = arith.constant 0 : index
    %26 = vector.load %arg5[%c0_21, %c0_22, %c0_23] : memref<4x8x8xf32, #tpu.memory_space<vmem>>, vector<4x8x8xf32>
    "tpu.trace_start"() <{level = 10 : i32, message = "gqk,gkd->gqd"}> : () -> ()
    %cst_24 = arith.constant dense<0.000000e+00> : vector<4x8x8xf32>
    %27 = tpu.matmul %16, %26, %cst_24 {dimension_numbers = #tpu.dot_dimension_numbers<[2], [1], [1], [2], [0, 0, 0, 1, 1, 2], [0], [0]>} : vector<4x8x8xf32>, vector<4x8x8xf32>, vector<4x8x8xf32> -> vector<4x8x8xf32>
    "tpu.trace_stop"() : () -> ()
    %28 = arith.addf %25, %27 : vector<4x8x8xf32>
    %c0_25 = arith.constant 0 : index
    %c0_26 = arith.constant 0 : index
    %c0_27 = arith.constant 0 : index
    %29 = vector.load %arg9[%c0_25, %c0_26, %c0_27] : memref<4x8x8xf32, #tpu.memory_space<vmem>>, vector<4x8x8xf32>
    tpu.vector_store %arg9[%c0_25, %c0_26, %c0_27], %28 {strides = array<i32>} : memref<4x8x8xf32, #tpu.memory_space<vmem>>, vector<4x8x8xf32>,
    %c0_28 = arith.constant 0 : index
    %c0_29 = arith.constant 0 : index
    %c0_30 = arith.constant 0 : index
    %30 = vector.load %arg7[%c0_28, %c0_29, %c0_30] : memref<4x8x1xf32, #tpu.memory_space<vmem>>, vector<4x8x1xf32>
    tpu.vector_store %arg7[%c0_28, %c0_29, %c0_30], %11 {strides = array<i32>} : memref<4x8x1xf32, #tpu.memory_space<vmem>>, vector<4x8x1xf32>,
    %c0_i32_31 = arith.constant 0 : i32
    %31 = arith.cmpi eq, %arg2, %c0_i32_31 : i32
    %32 = arith.extui %31 : i1 to i32
    %c0_i32_32 = arith.constant 0 : i32
    %33 = arith.cmpi ne, %32, %c0_i32_32 : i32
    scf.if %33 {
      %c0_33 = arith.constant 0 : index
      %c0_34 = arith.constant 0 : index
      %c0_35 = arith.constant 0 : index
      %34 = vector.load %arg8[%c0_33, %c0_34, %c0_35] : memref<4x8x1xf32, #tpu.memory_space<vmem>>, vector<4x8x1xf32>
      %35 = tpu.reciprocal %34 : vector<4x8x1xf32> -> vector<4x8x1xf32>
      %c0_36 = arith.constant 0 : index
      %c0_37 = arith.constant 0 : index
      %c0_38 = arith.constant 0 : index
      %36 = vector.load %arg9[%c0_36, %c0_37, %c0_38] : memref<4x8x8xf32, #tpu.memory_space<vmem>>, vector<4x8x8xf32>
      %37 = vector.broadcast %35 : vector<4x8x1xf32> to vector<4x8x8xf32>
      %38 = arith.mulf %36, %37 : vector<4x8x8xf32>
      %c0_39 = arith.constant 0 : index
      %c0_40 = arith.constant 0 : index
      %c0_41 = arith.constant 0 : index
      %39 = vector.load %arg6[%c0_39, %c0_40, %c0_41] : memref<4x8x8xf32, #tpu.memory_space<vmem>>, vector<4x8x8xf32>
      tpu.vector_store %arg6[%c0_39, %c0_40, %c0_41], %38 {strides = array<i32>} : memref<4x8x8xf32, #tpu.memory_space<vmem>>, vector<4x8x8xf32>,
    } else {
    }
    return
  }
  func.func @transform_0(%arg0: i32, %arg1: i32, %arg2: i32) -> (i32, i32, i32) {
    %c0_i32 = arith.constant 0 : i32
    %c0_i32_0 = arith.constant 0 : i32
    return %arg0, %arg1, %c0_i32 : i32, i32, i32
  }
  func.func @transform_1(%arg0: i32, %arg1: i32, %arg2: i32) -> (i32, i32, i32) {
    %c0_i32 = arith.constant 0 : i32
    %c0_i32_0 = arith.constant 0 : i32
    return %arg0, %arg2, %c0_i32 : i32, i32, i32
  }
  func.func @transform_2(%arg0: i32, %arg1: i32, %arg2: i32) -> (i32, i32, i32) {
    %c0_i32 = arith.constant 0 : i32
    %c0_i32_0 = arith.constant 0 : i32
    return %arg0, %arg2, %c0_i32 : i32, i32, i32
  }
  func.func @transform_3(%arg0: i32, %arg1: i32, %arg2: i32) -> (i32, i32, i32) {
    %c0_i32 = arith.constant 0 : i32
    %c0_i32_0 = arith.constant 0 : i32
    return %arg0, %arg1, %c0_i32 : i32, i32, i32
  }
}

module attributes {stable_mosaic.version = 11 : i64} {
  func.func @_linear_kernel_noacc(%arg0: i32, %arg1: i32, %arg2: i32, %arg3: memref<8x32xf32, #tpu.memory_space<vmem>>, %arg4: memref<32x32xf32, #tpu.memory_space<vmem>>, %arg5: memref<1x32xf32, #tpu.memory_space<vmem>>, %arg6: memref<8x32xf32, #tpu.memory_space<vmem>>) attributes {dimension_semantics = [#tpu.dimension_semantics<parallel>, #tpu.dimension_semantics<parallel>, #tpu.dimension_semantics<arbitrary>], iteration_bounds = array<i64: 2, 1, 1>, scalar_prefetch = 0 : i64, scratch_operands = 0 : i64, tpu.core_type = #tpu.core_type<tc>, window_params = [{transform_indices = @transform_0, window_bounds = array<i64: 8, 32>}, {transform_indices = @transform_1, window_bounds = array<i64: 32, 32>}, {transform_indices = @transform_2, window_bounds = array<i64: 1, 32>}, {transform_indices = @transform_3, window_bounds = array<i64: 8, 32>}]} {
    %c0 = arith.constant 0 : index
    %c0_0 = arith.constant 0 : index
    %0 = vector.load %arg3[%c0, %c0_0] : memref<8x32xf32, #tpu.memory_space<vmem>>, vector<8x32xf32>
    %c0_1 = arith.constant 0 : index
    %c0_2 = arith.constant 0 : index
    %1 = vector.load %arg4[%c0_1, %c0_2] : memref<32x32xf32, #tpu.memory_space<vmem>>, vector<32x32xf32>
    %cst = arith.constant dense<0.000000e+00> : vector<8x32xf32>
    %2 = tpu.matmul %0, %1, %cst {dimension_numbers = #tpu.dot_dimension_numbers<[1], [0], [0], [1], [0, 0, 1, 1], [], []>} : vector<8x32xf32>, vector<32x32xf32>, vector<8x32xf32> -> vector<8x32xf32>
    %c0_3 = arith.constant 0 : index
    %c0_4 = arith.constant 0 : index
    %3 = vector.load %arg5[%c0_3, %c0_4] : memref<1x32xf32, #tpu.memory_space<vmem>>, vector<1x32xf32>
    %4 = vector.broadcast %3 : vector<1x32xf32> to vector<8x32xf32>
    %5 = arith.addf %2, %4 : vector<8x32xf32>
    %c0_5 = arith.constant 0 : index
    %c0_6 = arith.constant 0 : index
    %6 = vector.load %arg6[%c0_5, %c0_6] : memref<8x32xf32, #tpu.memory_space<vmem>>, vector<8x32xf32>
    tpu.vector_store %arg6[%c0_5, %c0_6], %5 {strides = array<i32>} : memref<8x32xf32, #tpu.memory_space<vmem>>, vector<8x32xf32>,
    return
  }
  func.func @transform_0(%arg0: i32, %arg1: i32, %arg2: i32) -> (i32, i32) {
    %c0_i32 = arith.constant 0 : i32
    return %arg0, %arg2 : i32, i32
  }
  func.func @transform_1(%arg0: i32, %arg1: i32, %arg2: i32) -> (i32, i32) {
    %c0_i32 = arith.constant 0 : i32
    return %arg2, %arg1 : i32, i32
  }
  func.func @transform_2(%arg0: i32, %arg1: i32, %arg2: i32) -> (i32, i32) {
    %c0_i32 = arith.constant 0 : i32
    %c0_i32_0 = arith.constant 0 : i32
    return %c0_i32, %arg1 : i32, i32
  }
  func.func @transform_3(%arg0: i32, %arg1: i32, %arg2: i32) -> (i32, i32) {
    %c0_i32 = arith.constant 0 : i32
    return %arg0, %arg1 : i32, i32
  }
}

</mosaic_0001>

<bundles_post_ra>
// kernel: _forward_self.3
= control target key start
LH: loop header
LB: loop body
LE: loop exit
PB: predicated region body
PF: predicated region fallthrough
CT: control target
= control target key end

     0   :  { %s556_s12 = smov 0   ;;  %s558_s13 = smov 0   ;;  %s604_s0 = inlined_call_operand.vmem [shape: f32[16,32], index: 0, kind: input, shape index: {}]   ;;  %s605_s1 = inlined_call_operand.vmem [shape: f32[32,96], index: 1, kind: input, shape index: {}]   ;;  %s606_s2 = inlined_call_operand.vmem [shape: f32[1,96], index: 2, kind: input, shape index: {}]   ;;  %s607_s3 = inlined_call_operand.vmem [shape: f32[16,96], index: 3, kind: output, shape index: {}]  }
   0x1   :  { %s560_s14 = smov 0  }
   0x2 LB: > { %s32_s15 = sadd.s32 1, %s527_s13  ;;  %p453_p0 = scmp.ge.s32.totalorder %s531_s14, 1  ;;  %s531_s14 = sphi %s560_s14, %s13_s14   ;;  %s527_s13 = sphi %s558_s13, %s609_s13   ;;  %s523_s12 = sphi %s556_s12, %s608_s12  }
   0x3   : > { %p34_p1 = scmp.ge.s32.totalorder %s32_s15, 2  ;;  %p186_p2 = scmp.lt.s32.totalorder %s531_s14, 3 }
   0x5   : > { %s611_s15 = smov (%p34_p1, %s32_s15), 0  ;;  %p187_p3 = pnand %p453_p0, %p186_p2 }
   0x6   : > { %v252_v0 = vld [vmem:[%s605_s1] sm:$0xff] (!%p187_p3)  ;;  %v253_v1 = vld [vmem:[%s605_s1 + $0x8] sm:$0xff] (!%p187_p3)  ;;  %v254_v2 = vld [vmem:[%s605_s1 + $0x10] sm:$0xff] (!%p187_p3)  ;;  %v533_v3 = vmov (!%p187_p3), 0.0|0.0   ;;  %vm534_vm0 = vmmov (!%p187_p3), 0   ;;  %v535_v6 = vmov (!%p187_p3), 0.0  }
   0x7   : > { %190 = sbr.rel (%p187_p3) target bundleno = 233 (0xe9), region = 32  ;;  %476 = vmatprep.subr.bf16.mxu0 (!%p187_p3), %v533_v3  ;;  %v477_v4 = vpack.c.bf16 (!%p187_p3), %v253_v1, %v252_v0  ;;  %v255_v5 = vld [vmem:[%s605_s1 + $0x18] sm:$0xff] (!%p187_p3)  ;;  %473 = vmatprep.mubr.msk.f32.mxu0 (!%p187_p3), %vm534_vm0, %v535_v6  ;;  %p225_p4 = scmp.lt.s32.totalorder (!%p187_p3), %s523_s12, 1  ;;  %vm263_vm1 = vcmask (!%p187_p3), 261120   ;;  %v456_v9 = vld [vmem:[%s606_s2] ss:$0 sm:$0xff] (!%p187_p3) }
   0x8   : > { %v480_v7 = vpack.c.bf16 (!%p187_p3), %v255_v5, %v254_v2  ;;  %vm337_vm2 = vcmask (!%p187_p3), 785408  }
   0x9   : > { %478 = vmatpush3.bf16.msra.mxu0 (!%p187_p3), %v477_v4 }
   0xa   : > { %479 = vmatprep.subr.bf16.mxu0 (!%p187_p3), %v533_v3 }
   0xd   : > { %481 = vmatpush3.bf16.msra.mxu0 (!%p187_p3), %v480_v7 }
   0xe   : > { %s613_s12 = smov (!%p225_p4, %s523_s12), 1 }
   0xf   : > { %s454_s24 = sshll.u32 %s613_s12, 3 }
  0x10   : > { %s231_s27 = scalar_lea.vmem %s604_s0, %s454_s24  ;;  %s250_s5 = scalar_lea.vmem %s607_s3, %s454_s24 }
  0x11   : > { %v251_v8 = vld [vmem:[%s231_s27] sm:$0xff] }
  0x12   : > { %474 = vmatmul.mubr.msk.f32.vlgmr.msra.gmra.mrb[0].mxu0 %vm263_vm1, %v251_v8 }
  0xe5   : > { %v333_v10 = vpop.f32.mrb[0].mxu0 }
  0xe6   : > { %v334_v11 = vadd.f32 %v456_v9, %v333_v10  ;;  %v475_v12 = vpop.f32.mrb[1].mxu0 }
  0xe8   : > { %338 = vst.msk [vmem:[%s250_s5] sm:$0xff] %vm337_vm2, %v334_v11 }
  0xe9 PF: > { %s13_s14 = sadd.s32 1, %s531_s14   ;;  %s608_s12 = smov %s527_s13 }
  0xea   : > { %p10_p5 = scmp.ge.s32.totalorder %s13_s14, 4   ;;  %s609_s13 = smov %s611_s15 }
  0xec   :  { %12 = sbr.rel (!%p10_p5) target bundleno = 2 (0x2), region = 68 }

// kernel: _forward_self.5
= control target key start
LH: loop header
LB: loop body
LE: loop exit
PB: predicated region body
PF: predicated region fallthrough
CT: control target
= control target key end

     0   :  { %8 = vsyncpa [#allocation3], 0  ;;  %s777_s0 = inlined_call_operand.vmem [shape: f32[16,32], index: 0, kind: input, shape index: {}]   ;;  %s778_s1 = inlined_call_operand.vmem [shape: f32[32,32], index: 1, kind: input, shape index: {}]   ;;  %s779_s2 = inlined_call_operand.vmem [shape: f32[1,32], index: 2, kind: input, shape index: {}]   ;;  %s780_s3 = inlined_call_operand.hbm [shape: f32[16,32], index: 3, kind: output, shape index: {}]  }
   0x1   :  { %10 = vsyncpa [#allocation3 + $0x1], 0  ;;  %s650_s12 = smov 0   ;;  %s652_s13 = smov 0  }
   0x2   :  { %s654_s14 = smov 0   ;;  %s656_s15 = smov 0  }
   0x3   :  { %s658_s16 = smov 0   ;;  %s660_s17 = smov 0  }
   0x4 LB: > { %s451_s18 = sadd.s32 4294967295, %s624_s17   ;;  %s452_s19 = sadd.s32 4294967294, %s624_s17   ;;  %s624_s17 = sphi %s660_s17, %s16_s17   ;;  %s620_s16 = sphi %s658_s16, %s787_s16   ;;  %s616_s15 = sphi %s656_s15, %s786_s15   ;;  %s612_s14 = sphi %s654_s14, %s785_s14   ;;  %s608_s13 = sphi %s652_s13, %s784_s13   ;;  %s604_s12 = sphi %s650_s12, %s783_s12  }
   0x5   : > { %s35_s20 = sadd.s32 1, %s620_s16  ;;  %s126_s21 = sadd.s32 1, %s612_s14 }
   0x6   : > { %p37_p0 = scmp.ge.s32.totalorder %s35_s20, 2  ;;  %p136_p1 = scmp.ne.s32.totalorder %s612_s14, %s608_s13 }
   0x7   : > { %p137_p2 = scmp.eq.s32.totalorder %s451_s18, 1  ;;  %p142_p3 = scmp.ne.s32.totalorder %s608_s13, %s604_s12 }
   0x8   : > { %s789_s20 = smov (%p37_p0, %s35_s20), 0  ;;  %p143_p5 = scmp.eq.s32.totalorder %s452_s19, 1 }
   0x9   : > { %p690_p4 = por %p137_p2, %p136_p1  ;;  %s121_s23 = ssub.s32 %s620_s16, %s789_s20 }
   0xa   : > { %p457_p6 = scmp.ge.s32.totalorder %s624_s17, 1  ;;  %p124_p7 = scmp.eq.s32.totalorder %s121_s23, 0 }
   0xb   : > { %p697_p8 = por %p143_p5, %p142_p3  ;;  %p189_p9 = scmp.lt.s32.totalorder %s624_s17, 3 }
   0xc   : > { %s703_s25 = scalar_select %p124_p7, %s612_s14, %s126_s21  }
   0xd   : > { %p190_p10 = pnand %p457_p6, %p189_p9 }
   0xe   : > { %v246_v0 = vld [vmem:[%s778_s1] sm:$0xff] (!%p190_p10)  ;;  %v247_v1 = vld [vmem:[%s778_s1 + $0x8] sm:$0xff] (!%p190_p10)  ;;  %v248_v2 = vld [vmem:[%s778_s1 + $0x10] sm:$0xff] (!%p190_p10)  ;;  %v626_v3 = vmov (!%p190_p10), 0.0|0.0   ;;  %vm627_vm0 = vmmov (!%p190_p10), 0   ;;  %v628_v6 = vmov (!%p190_p10), 0.0  }
   0xf   : > { %193 = sbr.rel (%p190_p10) target bundleno = 255 (0xff), region = 32  ;;  %482 = vmatprep.subr.bf16.mxu0 (!%p190_p10), %v626_v3  ;;  %v483_v4 = vpack.c.bf16 (!%p190_p10), %v247_v1, %v246_v0  ;;  %v249_v5 = vld [vmem:[%s778_s1 + $0x18] sm:$0xff] (!%p190_p10)  ;;  %479 = vmatprep.mubr.msk.f32.mxu0 (!%p190_p10), %vm627_vm0, %v628_v6  ;;  %p226_p11 = scmp.lt.s32.totalorder (!%p190_p10), %s616_s15, 1  ;;  %vm257_vm1 = vcmask (!%p190_p10), 261120   ;;  %v460_v9 = vld [vmem:[%s779_s2] ss:$0 sm:$0xff] (!%p190_p10) }
  0x10   : > { %v486_v7 = vpack.c.bf16 (!%p190_p10), %v249_v5, %v248_v2  ;;  %s223_s18 = sand.u32 (!%p190_p10), 1, %s608_s13   ;;  %s463_s26 = sshll.u32 (!%p190_p10), %s616_s15, 7 }
  0x11   : > { %484 = vmatpush3.bf16.msra.mxu0 (!%p190_p10), %v483_v4  ;;  %s458_s19 = sshll.u32 (!%p190_p10), %s223_s18, 3  ;;  %s730_s4 = scalar_lea.hbm (!%p190_p10), %s780_s3, %s463_s26 }
  0x12   : > { %485 = vmatprep.subr.bf16.mxu0 (!%p190_p10), %v626_v3  ;;  %s225_s27 = scalar_lea.vmem (!%p190_p10), [#allocation2], %s458_s19  ;;  %s333_s5 = scalar_lea.sflag (!%p190_p10), [#allocation3], %s223_s18 }
  0x13   : > { %s347_s28 = sshll.u32 (!%p190_p10), %s225_s27, 4  ;;  %s732_s28 = int_to_ptr.vmem [resolvable:$true] %s347_s28 }
  0x14   : > { %s546_s6 = scalar_lea.vmem (!%p190_p10), %s732_s28, 128 }
  0x15   : > { %487 = vmatpush3.bf16.msra.mxu0 (!%p190_p10), %v486_v7  ;;  %p547_p12 = scmp.ne.s32.totalorder (!%p190_p10), %s732_s28, %s546_s6 }
  0x16   : > { %s227_s7 = scalar_select %p226_p11, %s616_s15, 1 }
  0x17   : > { %p548_p13 = pnand %p547_p12, %p690_p4  ;;  %s629_s15 = smov [#allocation2]  }
  0x18   : > { %s459_s8 = sshll.u32 %s227_s7, 3  ;;  %s550_s7 = sshll.u32 %s629_s15, 4  ;;  %s551_s7 = int_to_ptr.vmem [resolvable:$false] %s550_s7 }
  0x19   : > { %s232_s11 = scalar_lea.vmem %s777_s0, %s459_s8  ;;  %p549_p0 = pneg %p548_p13 }
  0x1a   : > { %v245_v8 = vld [vmem:[%s232_s11] sm:$0xff]  ;;  %s552_s8 = scalar_lea.vmem %s551_s7, 256  ;;  %p553_p1 = scmp.lt.s32.totalorder %s732_s28, %s551_s7 }
  0x1b   : > { %480 = vmatmul.mubr.msk.f32.vlgmr.msra.gmra.mrb[0].mxu0 %vm257_vm1, %v245_v8  ;;  %p554_p2 = scmp.lt.s32.totalorder %s552_s8, %s546_s6 }
  0x1d   : > { %p555_p3 = por %p554_p2, %p553_p1 }
  0x1f   : > { %p556_p5 = pnand %p555_p3, %p549_p0 }
  0xee   : > { %v327_v10 = vpop.f32.mrb[0].mxu0 }
  0xef   : > { %v328_v11 = vadd.f32 %v460_v9, %v327_v10  ;;  %v481_v12 = vpop.f32.mrb[1].mxu0 }
  0xf1   : > { %331 = vst.msk [vmem:[%s225_s27] sm:$0xff] %vm257_vm1, %v328_v11 }
  0xf2   : > { %559 = shalt.err (!%p556_p5)
}
  0xf3   : > { %s560_s9 = scalar_lea.hbm %s730_s4, 128  ;;  %s564_s18 = scalar_lea.hbm %s780_s3, 256 }
  0xf4   : > { %p561_p6 = scmp.ne.s32.totalorder %s730_s4, %s560_s9  ;;  %p565_p10 = scmp.lt.u32.totalorder %s730_s4, %s780_s3 }
  0xf5   : > { %p566_p11 = scmp.lt.u32.totalorder %s564_s18, %s560_s9  ;;  %p568_p13 = scmp.lt.u32.totalorder %s560_s9, %s730_s4 }
  0xf6   : > { %p562_p7 = pnand %p561_p6, %p690_p4 }
  0xf7   : > { %p567_p12 = por %p566_p11, %p565_p10 }
  0xf8   : > { %p563_p9 = pneg %p562_p7 }
  0xf9   : > { %p569_p0 = por %p568_p13, %p567_p12 }
  0xfb   : > { %p570_p1 = pnand %p569_p0, %p563_p9 }
  0xfd   : > { %573 = shalt.err (!%p570_p1)
}
  0xfe   : > { %488 = dma.vmem_to_hbm [thread:$0]  (%p690_p4), %s732_s28, 128, %s730_s4, %s333_s5  }
  0xff PF: > { %p494_p2 = scmp.ge.s32.totalorder %s624_s17, 2  ;;  %s359_s23 = sand.u32 1, %s604_s12  }
 0x100   : > { %s360_s26 = scalar_lea.sflag [#allocation3], %s359_s23 }
 0x101   : > { %p491_p3 = pnand %p494_p2, %p697_p8 }
 0x103   : > { %599 = dma.done.wait (!%p491_p3), %s360_s26, 128  }
 0x104   : > { %601 = vsyncadd (!%p491_p3), %s360_s26, 4294967168  ;;  %s16_s17 = sadd.s32 1, %s624_s17   ;;  %s783_s12 = smov %s608_s13 }
 0x105   : > { %p13_p5 = scmp.ge.s32.totalorder %s16_s17, 4   ;;  %s784_s13 = smov %s612_s14 }
 0x106   : > { %s785_s14 = smov %s703_s25  ;;  %s786_s15 = smov %s620_s16 }
 0x107   : > { %s787_s16 = smov %s789_s20  ;;  %15 = sbr.rel (!%p13_p5) target bundleno = 4 (0x4), region = 73 }
 0x10e   :  { %365 = vsyncpa [#allocation3], 1 }
 0x10f   :  { %367 = vsyncpa [#allocation3 + $0x1], 1 }

// kernel: _forward_self.4
= control target key start
LH: loop header
LB: loop body
LE: loop exit
PB: predicated region body
PF: predicated region fallthrough
CT: control target
= control target key end

     0   :  { %s1381_s12 = smov 0   ;;  %s1383_s13 = smov 0   ;;  %s1530_s0 = inlined_call_operand.vmem [shape: f32[8,8,8], index: 0, kind: input, shape index: {}]   ;;  %s1531_s1 = inlined_call_operand.vmem [shape: f32[8,8,8], index: 1, kind: input, shape index: {}]   ;;  %s1532_s2 = inlined_call_operand.vmem [shape: f32[8,8,8], index: 2, kind: input, shape index: {}]   ;;  %s1533_s3 = inlined_call_operand.vmem [shape: f32[8,8,8], index: 3, kind: output, shape index: {}]  }
   0x1   :  { %s1385_s14 = smov 0  }
   0x2 LB: > { %s32_s15 = sadd.s32 1, %s1351_s13  ;;  %p1200_p0 = scmp.ge.s32.totalorder %s1355_s14, 1  ;;  %s1355_s14 = sphi %s1385_s14, %s13_s14   ;;  %s1351_s13 = sphi %s1383_s13, %s1535_s13   ;;  %s1347_s12 = sphi %s1381_s12, %s1534_s12  }
   0x3   : > { %p34_p1 = scmp.ge.s32.totalorder %s32_s15, 2  ;;  %p196_p2 = scmp.lt.s32.totalorder %s1355_s14, 3 }
   0x5   : > { %s1537_s15 = smov (%p34_p1, %s32_s15), 0  ;;  %p197_p3 = pnand %p1200_p0, %p196_p2 }
   0x6   : > { %s1201_s16 = sshll.u32 (!%p197_p3), %s1347_s12, 2  ;;  %vm291_vm0 = vcmask (!%p197_p3), 64512   ;;  %v1357_v0 = vmov (!%p197_p3), 0.0   ;;  %vm1358_vm1 = vmmov (!%p197_p3), 0   ;;  %vm282_vm2 = vcmask (!%p197_p3), 7168  }
   0x7   : > { %200 = sbr.rel (%p197_p3) target bundleno = 830 (0x33e), region = 32  ;;  %1239 = vmatprep.subr.mxu0 (!%p197_p3), %v1357_v0  ;;  %p243_p4 = scmp.lt.s32.totalorder (!%p197_p3), %s1201_s16, 7  ;;  %292 = vst.msk [vmem:[#allocation4] sm:$0xff] (!%p197_p3), %vm291_vm0, %v1357_v0  ;;  %293 = vst.msk [vmem:[#allocation4 + $0x8] sm:$0xff] (!%p197_p3), %vm291_vm0, %v1357_v0  ;;  %1241 = vmatprep.mubr.msk.f32.mxu0 (!%p197_p3), %vm1358_vm1, %v1357_v0  ;;  %v1359_v9 = vmov (!%p197_p3), -inf   ;;  %v1360_v26 = vmov (!%p197_p3), 0  }
   0x8   : > { %294 = vst.msk [vmem:[#allocation4 + $0x10] sm:$0xff] (!%p197_p3), %vm291_vm0, %v1357_v0  ;;  %295 = vst.msk [vmem:[#allocation4 + $0x18] sm:$0xff] (!%p197_p3), %vm291_vm0, %v1357_v0  ;;  %1244 = vmatprep.subr.mxu1 (!%p197_p3), %v1357_v0  ;;  %1246 = vmatprep.mubr.msk.f32.mxu1 (!%p197_p3), %vm1358_vm1, %v1357_v0 }
   0x9   : > { %283 = vst.msk [vmem:[#allocation2] sm:$0xff] (!%p197_p3), %vm282_vm2, %v1359_v9  ;;  %284 = vst.msk [vmem:[#allocation2 + $0x8] sm:$0xff] (!%p197_p3), %vm282_vm2, %v1359_v9  ;;  %1307 = vset.pattern.permute.xlu0 (!%p197_p3), %v1360_v26  ;;  %1308 = vset.pattern.permute.xlu1 (!%p197_p3), %v1360_v26 }
   0xa   : > { %285 = vst.msk [vmem:[#allocation2 + $0x10] sm:$0xff] (!%p197_p3), %vm282_vm2, %v1359_v9  ;;  %286 = vst.msk [vmem:[#allocation2 + $0x18] sm:$0xff] (!%p197_p3), %vm282_vm2, %v1359_v9 }
   0xb   : > { %287 = vst.msk [vmem:[#allocation3] sm:$0xff] (!%p197_p3), %vm282_vm2, %v1357_v0  ;;  %288 = vst.msk [vmem:[#allocation3 + $0x8] sm:$0xff] (!%p197_p3), %vm282_vm2, %v1357_v0 }
   0xc   : > { %289 = vst.msk [vmem:[#allocation3 + $0x10] sm:$0xff] (!%p197_p3), %vm282_vm2, %v1357_v0  ;;  %290 = vst.msk [vmem:[#allocation3 + $0x18] sm:$0xff] (!%p197_p3), %vm282_vm2, %v1357_v0 }
   0xe   : > { %s1539_s16 = smov (!%p243_p4, %s1201_s16), 7 }
   0xf   : > { %s1413_s17 = sshll.u32 %s1539_s16, 3 }
  0x10   : > { %s258_s20 = scalar_lea.vmem %s1531_s1, %s1413_s17  ;;  %s249_s23 = scalar_lea.vmem %s1530_s0, %s1413_s17  ;;  %v1459_v27 = vld [vmem:[#allocation2] sm:$0xff]  ;;  %v1464_v30 = vld [vmem:[#allocation2 + $0x8] sm:$0xff] }
  0x11   : > { %v300_v1 = vld [vmem:[%s258_s20] sm:$0xff]  ;;  %v301_v2 = vld [vmem:[%s258_s20 + $0x8] sm:$0xff]  ;;  %v302_v5 = vld [vmem:[%s258_s20 + $0x10] sm:$0xff]  ;;  %s267_s26 = scalar_lea.vmem %s1532_s2, %s1413_s17  ;;  %s276_s29 = scalar_lea.vmem %s1533_s3, %s1413_s17 }
  0x12   : > { %1240 = vmatpush3.xpose.msk.msra.mxu0 %vm291_vm0, %v300_v1  ;;  %v296_v3 = vld [vmem:[%s249_s23] sm:$0xff]  ;;  %1245 = vmatpush3.xpose.msk.msra.mxu1 %vm291_vm0, %v301_v2  ;;  %v297_v4 = vld [vmem:[%s249_s23 + $0x8] sm:$0xff]  ;;  %v303_v6 = vld [vmem:[%s258_s20 + $0x18] sm:$0xff] }
  0x13   : > { %1249 = vmatprep.subr.mxu0 %v1357_v0  ;;  %1254 = vmatprep.subr.mxu1 %v1357_v0  ;;  %v298_v7 = vld [vmem:[%s249_s23 + $0x10] sm:$0xff]  ;;  %v299_v8 = vld [vmem:[%s249_s23 + $0x18] sm:$0xff]  ;;  %v734_v43 = vld [vmem:[%s267_s26] sm:$0xff] }
  0x14   : > { %v1466_v31 = vld [vmem:[#allocation2 + $0x10] sm:$0xff]  ;;  %v1475_v37 = vld [vmem:[#allocation2 + $0x18] sm:$0xff]  ;;  %v735_v44 = vld [vmem:[%s267_s26 + $0x8] sm:$0xff] }
  0x15   : > { %1242 = vmatmul.mubr.msk.f32.vlgmr.msra.gmra.mrb[0].mxu0 %vm291_vm0, %v296_v3  ;;  %1247 = vmatmul.mubr.msk.f32.vlgmr.msra.gmra.mrb[0].mxu1 %vm291_vm0, %v297_v4  ;;  %v736_v56 = vld [vmem:[%s267_s26 + $0x10] sm:$0xff]  ;;  %v737_v60 = vld [vmem:[%s267_s26 + $0x18] sm:$0xff] }
  0x16   : > { %1250 = vmatpush3.xpose.msk.msra.mxu0 %vm291_vm0, %v302_v5  ;;  %1251 = vmatprep.mubr.msk.f32.mxu0 %vm1358_vm1, %v1357_v0 }
  0x17   : > { %1255 = vmatpush3.xpose.msk.msra.mxu1 %vm291_vm0, %v303_v6  ;;  %1256 = vmatprep.mubr.msk.f32.mxu1 %vm1358_vm1, %v1357_v0 }
  0x18   : > { %1259 = vmatprep.subr.mxu0 %v1357_v0  ;;  %1264 = vmatprep.subr.mxu1 %v1357_v0 }
  0x19   : > { %1252 = vmatmul.mubr.msk.f32.vlgmr.msra.gmra.mrb[2].mxu0 %vm291_vm0, %v298_v7 }
  0x1a   : > { %1257 = vmatmul.mubr.msk.f32.vlgmr.msra.gmra.mrb[2].mxu1 %vm291_vm0, %v299_v8  ;;  %1261 = vmatprep.mubr.msk.f32.mxu0 %vm1358_vm1, %v1357_v0 }
  0x1b   : > { %1266 = vmatprep.mubr.msk.f32.mxu1 %vm1358_vm1, %v1357_v0  ;;  %1260 = vmatpush3.msra.mxu0 %v734_v43 }
  0x1c   : > { %1269 = vmatprep.subr.mxu0 %v1357_v0  ;;  %1265 = vmatpush3.msra.mxu1 %v735_v44 }
  0x1d   : > { %1274 = vmatprep.subr.mxu1 %v1357_v0 }
  0xe8   : > { %v377_v10 = vpop.f32.mrb[0].mxu0  ;;  %v453_v11 = vpop.f32.mrb[0].mxu1 }
  0xe9   : > { %v609_v12 = vmul.f32 0.35355338, %v377_v10  ;;  %v1243_v13 = vpop.f32.mrb[1].mxu0  ;;  %v610_v14 = vmul.f32 0.35355338, %v453_v11  ;;  %v1248_v15 = vpop.f32.mrb[1].mxu1 }
  0xea   : > { %v677_v11 = vld [vmem:[#allocation3] sm:$0xff] }
  0xeb   : > { %v617_v16 = vsel %vm291_vm0, %v609_v12, -inf  ;;  %v620_v19 = vsel %vm291_vm0, %v610_v14, -inf }
  0xec   : > { %618 = vmax.xlane.f32.xlu0 %v617_v16  ;;  %v529_v17 = vpop.f32.mrb[2].mxu0 }
  0xed   : > { %v611_v18 = vmul.f32 0.35355338, %v529_v17  ;;  %v1253_v20 = vpop.f32.mrb[3].mxu0  ;;  %v605_v21 = vpop.f32.mrb[2].mxu1 }
  0xee   : > { %v612_v22 = vmul.f32 0.35355338, %v605_v21  ;;  %v1258_v23 = vpop.f32.mrb[3].mxu1 }
  0xef   : > { %v623_v24 = vsel %vm291_vm0, %v611_v18, -inf }
  0xf0   : > { %621 = vmax.xlane.f32.xlu0 %v620_v19  ;;  %624 = vmax.xlane.f32.xlu1 %v623_v24  ;;  %v626_v25 = vsel %vm291_vm0, %v612_v22, -inf }
  0xf4   : > { %627 = vmax.xlane.f32.xlu1 %v626_v25 }
 0x179   : > { %v619_v28 = vpop.xlane.xlu0 %618 }
 0x17a   : > { %v1462_v29 = vmax.f32 %v1459_v27, %v619_v28 }
 0x17c   : > { %v633_v32 = vsub.f32 %v1459_v27, %v1462_v29  ;;  %1038 = vst.msk [vmem:[#allocation2] sm:$0xff] %vm282_vm2, %v1462_v29  ;;  %647 = vperm.xlu0 %1307, %v1462_v29  }
 0x17d   : > { %v622_v33 = vpop.xlane.xlu0 %621  ;;  %v625_v34 = vpop.xlane.xlu1 %624 }
 0x17e   : > { %v630_v35 = vmax.f32 %v1464_v30, %v622_v33  ;;  %v631_v36 = vmax.f32 %v1466_v31, %v625_v34  ;;  %v637_v5 = vmul.f32 1.442695, %v633_v32 }
 0x180   : > { %v634_v38 = vsub.f32 %v1464_v30, %v630_v35  ;;  %1039 = vst.msk [vmem:[#allocation2 + $0x8] sm:$0xff] %vm282_vm2, %v630_v35  ;;  %652 = vperm.xlu1 %1308, %v630_v35   ;;  %v635_v39 = vsub.f32 %v1466_v31, %v631_v36  ;;  %1040 = vst.msk [vmem:[#allocation2 + $0x10] sm:$0xff] %vm282_vm2, %v631_v36  ;;  %v706_v35 = vld [vmem:[#allocation4] sm:$0xff] }
 0x181   : > { %v628_v40 = vpop.xlane.xlu1 %627 }
 0x182   : > { %v632_v41 = vmax.f32 %v1475_v37, %v628_v40  ;;  %v639_v3 = vmul.f32 1.442695, %v634_v38  ;;  %v707_v38 = vld [vmem:[#allocation4 + $0x8] sm:$0xff] }
 0x184   : > { %657 = vperm.xlu1 %1308, %v631_v36   ;;  %v636_v42 = vsub.f32 %v1475_v37, %v632_v41  ;;  %1041 = vst.msk [vmem:[#allocation2 + $0x18] sm:$0xff] %vm282_vm2, %v632_v41 }
 0x186   : > { %v643_v6 = vmul.f32 1.442695, %v636_v42 }
 0x188   : > { %662 = vperm.xlu1 %1308, %v632_v41  }
 0x1fb   : > { %v648_v45 = vpop.permute.xlu0 %647 }
 0x1fc   : > { %v665_v46 = vsub.f32 %v609_v12, %v648_v45  ;;  %v708_v45 = vld [vmem:[#allocation4 + $0x10] sm:$0xff] }
 0x1fe   : > { %v669_v47 = vmul.f32 1.442695, %v665_v46 }
 0x1ff   : > { %v653_v48 = vpop.permute.xlu1 %652 }
 0x200   : > { %1309 = vpow2.f32 %v669_v47  ;;  %v666_v49 = vsub.f32 %v610_v14, %v653_v48  ;;  %v678_v14 = vld [vmem:[#allocation3 + $0x8] sm:$0xff] }
 0x202   : > { %v671_v50 = vmul.f32 1.442695, %v666_v49 }
 0x203   : > { %v658_v51 = vpop.permute.xlu1 %657 }
 0x204   : > { %1311 = vpow2.f32 %v671_v50  ;;  %v667_v52 = vsub.f32 %v611_v18, %v658_v51  ;;  %v679_v18 = vld [vmem:[#allocation3 + $0x10] sm:$0xff]  ;;  %v709_v50 = vld [vmem:[#allocation4 + $0x18] sm:$0xff] }
 0x206   : > { %v673_v53 = vmul.f32 1.442695, %v667_v52 }
 0x207   : > { %v663_v54 = vpop.permute.xlu1 %662 }
 0x208   : > { %1313 = vpow2.f32 %v673_v53  ;;  %v668_v55 = vsub.f32 %v612_v22, %v663_v54  ;;  %v680_v22 = vld [vmem:[#allocation3 + $0x18] sm:$0xff] }
 0x20a   : > { %v1310_v57 = vpop.eup %1309  ;;  %v675_v58 = vmul.f32 1.442695, %v668_v55 }
 0x20b   : > { %1262 = vmatmul.mubr.msk.f32.vlgmr.msra.gmra.mrb[4].mxu0 %vm291_vm0, %v1310_v57  ;;  %v685_v59 = vsel %vm291_vm0, %v1310_v57, 0.0 }
 0x20c   : > { %1315 = vpow2.f32 %v675_v58  ;;  %686 = vadd.xlane.f32.xlu1 %v685_v59  ;;  %1270 = vmatpush3.msra.mxu0 %v736_v56 }
 0x20d   : > { %1271 = vmatprep.mubr.msk.f32.mxu0 %vm1358_vm1, %v1357_v0  ;;  %1317 = vpow2.f32 %v639_v3 }
 0x20e   : > { %v1312_v61 = vpop.eup %1311  ;;  %1319 = vpow2.f32 %v637_v5 }
 0x20f   : > { %1267 = vmatmul.mubr.msk.f32.vlgmr.msra.gmra.mrb[4].mxu1 %vm291_vm0, %v1312_v61  ;;  %v688_v62 = vsel %vm291_vm0, %v1312_v61, 0.0 }
 0x210   : > { %689 = vadd.xlane.f32.xlu0 %v688_v62  ;;  %1275 = vmatpush3.msra.mxu1 %v737_v60 }
 0x211   : > { %1276 = vmatprep.mubr.msk.f32.mxu1 %vm1358_vm1, %v1357_v0  ;;  %v641_v0 = vmul.f32 1.442695, %v635_v39 }
 0x212   : > { %v1314_v63 = vpop.eup %1313 }
 0x213   : > { %1272 = vmatmul.mubr.msk.f32.vlgmr.msra.gmra.mrb[6].mxu0 %vm291_vm0, %v1314_v63  ;;  %v691_v1 = vsel %vm291_vm0, %v1314_v63, 0.0  ;;  %1321 = vpow2.f32 %v641_v0 }
 0x214   : > { %692 = vadd.xlane.f32.xlu1 %v691_v1  ;;  %1323 = vpow2.f32 %v643_v6 }
 0x216   : > { %v1316_v2 = vpop.eup %1315 }
 0x217   : > { %1277 = vmatmul.mubr.msk.f32.vlgmr.msra.gmra.mrb[6].mxu1 %vm291_vm0, %v1316_v2  ;;  %v694_v4 = vsel %vm291_vm0, %v1316_v2, 0.0  ;;  %v1318_v7 = vpop.eup %1317 }
 0x218   : > { %695 = vadd.xlane.f32.xlu1 %v694_v4  ;;  %v1320_v8 = vpop.eup %1319  ;;  %v682_v16 = vmul.f32 %v1318_v7, %v678_v14 }
 0x219   : > { %v681_v12 = vmul.f32 %v1320_v8, %v677_v11 }
 0x21d   : > { %v1322_v9 = vpop.eup %1321 }
 0x21e   : > { %v1324_v10 = vpop.eup %1323  ;;  %v683_v20 = vmul.f32 %v1322_v9, %v679_v18 }
 0x21f   : > { %v684_v25 = vmul.f32 %v1324_v10, %v680_v22 }
 0x226   : > { %717 = vperm.xlu0 %1307, %v1318_v7  }
 0x229   : > { %712 = vperm.xlu1 %1308, %v1320_v8  }
 0x22d   : > { %722 = vperm.xlu1 %1308, %v1322_v9  }
 0x231   : > { %727 = vperm.xlu1 %1308, %v1324_v10  }
 0x299   : > { %v687_v13 = vpop.xlane.xlu1 %686 }
 0x29a   : > { %v697_v15 = vadd.f32 %v687_v13, %v681_v12 }
 0x29c   : > { %702 = vst.msk [vmem:[#allocation3] sm:$0xff] %vm282_vm2, %v697_v15 }
 0x29d   : > { %v690_v17 = vpop.xlane.xlu0 %689 }
 0x29e   : > { %v698_v19 = vadd.f32 %v690_v17, %v682_v16 }
 0x2a0   : > { %703 = vst.msk [vmem:[#allocation3 + $0x8] sm:$0xff] %vm282_vm2, %v698_v19 }
 0x2a1   : > { %v693_v21 = vpop.xlane.xlu1 %692 }
 0x2a2   : > { %v699_v23 = vadd.f32 %v693_v21, %v683_v20 }
 0x2a3   : > { %v1045_v24 = vld [vmem:[#allocation3] sm:$0xff] }
 0x2a4   : > { %704 = vst.msk [vmem:[#allocation3 + $0x10] sm:$0xff] %vm282_vm2, %v699_v23  ;;  %1325 = vrcp.f32 %v1045_v24 }
 0x2a5   : > { %v696_v26 = vpop.xlane.xlu1 %695  ;;  %v718_v39 = vpop.permute.xlu0 %717 }
 0x2a6   : > { %v700_v27 = vadd.f32 %v696_v26, %v684_v25  ;;  %v731_v44 = vmul.f32 %v718_v39, %v707_v38 }
 0x2a7   : > { %v1046_v28 = vld [vmem:[#allocation3 + $0x8] sm:$0xff] }
 0x2a8   : > { %705 = vst.msk [vmem:[#allocation3 + $0x18] sm:$0xff] %vm282_vm2, %v700_v27  ;;  %1327 = vrcp.f32 %v1046_v28 }
 0x2a9   : > { %v713_v36 = vpop.permute.xlu1 %712 }
 0x2aa   : > { %v730_v37 = vmul.f32 %v713_v36, %v706_v35 }
 0x2ab   : > { %v1047_v29 = vld [vmem:[#allocation3 + $0x10] sm:$0xff] }
 0x2ac   : > { %1329 = vrcp.f32 %v1047_v29 }
 0x2ad   : > { %v723_v43 = vpop.permute.xlu1 %722 }
 0x2ae   : > { %v1326_v30 = vpop.eup %1325  ;;  %v732_v49 = vmul.f32 %v723_v43, %v708_v45 }
 0x2af   : > { %1059 = vperm.xlu1 %1308, %v1326_v30   ;;  %v1048_v31 = vld [vmem:[#allocation3 + $0x18] sm:$0xff] }
 0x2b0   : > { %1331 = vrcp.f32 %v1048_v31 }
 0x2b1   : > { %v728_v51 = vpop.permute.xlu1 %727 }
 0x2b2   : > { %v1328_v32 = vpop.eup %1327  ;;  %v733_v55 = vmul.f32 %v728_v51, %v709_v50 }
 0x2b3   : > { %1064 = vperm.xlu0 %1307, %v1328_v32  }
 0x2b6   : > { %v1330_v33 = vpop.eup %1329 }
 0x2b7   : > { %1069 = vperm.xlu1 %1308, %v1330_v33  }
 0x2ba   : > { %v1332_v34 = vpop.eup %1331 }
 0x2bb   : > { %1074 = vperm.xlu0 %1307, %v1332_v34  }
 0x2de   : > { %v807_v40 = vpop.f32.mrb[4].mxu0 }
 0x2df   : > { %v1030_v41 = vadd.f32 %v807_v40, %v730_v37  ;;  %v1263_v42 = vpop.f32.mrb[5].mxu0 }
 0x2e1   : > { %1034 = vst.msk [vmem:[#allocation4] sm:$0xff] %vm291_vm0, %v1030_v41 }
 0x2e2   : > { %v880_v46 = vpop.f32.mrb[4].mxu1 }
 0x2e3   : > { %v1031_v47 = vadd.f32 %v880_v46, %v731_v44  ;;  %v1268_v48 = vpop.f32.mrb[5].mxu1 }
 0x2e5   : > { %1035 = vst.msk [vmem:[#allocation4 + $0x8] sm:$0xff] %vm291_vm0, %v1031_v47 }
 0x2e6   : > { %v953_v52 = vpop.f32.mrb[6].mxu0 }
 0x2e7   : > { %v1032_v53 = vadd.f32 %v953_v52, %v732_v49  ;;  %v1273_v54 = vpop.f32.mrb[7].mxu0 }
 0x2e8   : > { %v1053_v60 = vld [vmem:[#allocation4] sm:$0xff] }
 0x2e9   : > { %1036 = vst.msk [vmem:[#allocation4 + $0x10] sm:$0xff] %vm291_vm0, %v1032_v53 }
 0x2ea   : > { %v1026_v56 = vpop.f32.mrb[6].mxu1 }
 0x2eb   : > { %v1033_v57 = vadd.f32 %v1026_v56, %v733_v55  ;;  %v1278_v58 = vpop.f32.mrb[7].mxu1 }
 0x2ec   : > { %v1054_v62 = vld [vmem:[#allocation4 + $0x8] sm:$0xff] }
 0x2ed   : > { %1037 = vst.msk [vmem:[#allocation4 + $0x18] sm:$0xff] %vm291_vm0, %v1033_v57 }
 0x2f0   : > { %v1055_v3 = vld [vmem:[#allocation4 + $0x10] sm:$0xff] }
 0x2f4   : > { %v1056_v0 = vld [vmem:[#allocation4 + $0x18] sm:$0xff] }
 0x32e   : > { %v1060_v59 = vpop.permute.xlu1 %1059 }
 0x32f   : > { %v1077_v61 = vmul.f32 %v1060_v59, %v1053_v60 }
 0x331   : > { %1081 = vst.msk [vmem:[%s276_s29] sm:$0xff] %vm291_vm0, %v1077_v61 }
 0x332   : > { %v1065_v63 = vpop.permute.xlu0 %1064 }
 0x333   : > { %v1078_v1 = vmul.f32 %v1065_v63, %v1054_v62 }
 0x335   : > { %1082 = vst.msk [vmem:[%s276_s29 + $0x8] sm:$0xff] %vm291_vm0, %v1078_v1 }
 0x336   : > { %v1070_v2 = vpop.permute.xlu1 %1069 }
 0x337   : > { %v1079_v4 = vmul.f32 %v1070_v2, %v1055_v3 }
 0x339   : > { %1083 = vst.msk [vmem:[%s276_s29 + $0x10] sm:$0xff] %vm291_vm0, %v1079_v4 }
 0x33a   : > { %v1075_v5 = vpop.permute.xlu0 %1074 }
 0x33b   : > { %v1080_v6 = vmul.f32 %v1075_v5, %v1056_v0 }
 0x33d   : > { %1084 = vst.msk [vmem:[%s276_s29 + $0x18] sm:$0xff] %vm291_vm0, %v1080_v6 }
 0x33e PF: > { %s13_s14 = sadd.s32 1, %s1355_s14   ;;  %s1534_s12 = smov %s1351_s13 }
 0x33f   : > { %p10_p5 = scmp.ge.s32.totalorder %s13_s14, 4   ;;  %s1535_s13 = smov %s1537_s15 }
 0x341   :  { %12 = sbr.rel (!%p10_p5) target bundleno = 2 (0x2), region = 76 }

</bundles_post_ra>
